<compile_context>
chip_gen: v5e
topology: v5e:2x2
jax: 0.10.0
libtpu: 0.0.40
codegen_flags: <defaults>
</compile_context>

<pallas_src>
import numpy as np
import jax
import jax.numpy as jnp
from jax.experimental import pallas as pl
from jax.experimental.pallas import tpu as pltpu

KPAD = 128   # padded contraction dim for conv1 (9*cin = 36 -> 128)
CPAD = 128   # padded channel dim for conv1/conv2 outputs (8/16 -> 128)


# ---------------------------------------------------------------------------
# Fused Pallas kernel: conv1 + ReLU + conv2 + ReLU + avgpool + flatten
# ---------------------------------------------------------------------------
def _fused_tower_kernel(p1_ref, w1_ref, b1_ref, s2_ref, w2_ref, b2_ref,
                        pool_ref, o_ref):
    # conv1: lane-dense (HW1,128)@(128,128) matmul + bias + ReLU, VMEM-resident
    a1 = jnp.dot(p1_ref[0], w1_ref[...], preferred_element_type=jnp.float32)
    a1 = jnp.maximum(a1 + b1_ref[...], 0.0)                      # (HW1, CPAD)

    # conv2: on-chip im2col via 0/1 selection matmuls, one 3x3 tap at a time
    ntaps = s2_ref.shape[0]
    acc = jnp.zeros((s2_ref.shape[1], w2_ref.shape[2]), jnp.float32)
    for t in range(ntaps):                                       # unrolled
        g = jnp.dot(s2_ref[t], a1, preferred_element_type=jnp.float32)
        acc = acc + jnp.dot(g, w2_ref[t], preferred_element_type=jnp.float32)
    a2 = jnp.maximum(acc + b2_ref[...], 0.0)                     # (HW2, CPAD)

    # 4x4 average pool as a matmul with the constant pooling matrix
    pooled = jnp.dot(pool_ref[...], a2, preferred_element_type=jnp.float32)
    o_ref[0] = pooled[:, :o_ref.shape[-1]].astype(o_ref.dtype)


# ---------------------------------------------------------------------------
# Trace-time constant builders (folded into the jitted graph)
# ---------------------------------------------------------------------------
def _build_conv_gather(h, w, ho, wo, kh, kw, stride, pad):
    """S[t] @ a(h*w, C) == zero-padded im2col tap t of a (h,w,C) activation."""
    S = np.zeros((kh * kw, ho * wo, h * w), np.float32)
    for dy in range(kh):
        for dx in range(kw):
            t = dy * kw + dx
            for i in range(ho):
                for j in range(wo):
                    u = i * stride + dy - pad
                    v = j * stride + dx - pad
                    if 0 <= u < h and 0 <= v < w:
                        S[t, i * wo + j, u * w + v] = 1.0
    return jnp.asarray(S)


def _build_pool_matrix(h, w, kh, kw):
    """P @ a(h*w, C) == avg_pool2d(a, (kh,kw)) flattened spatially (row-major)."""
    ph, pw = h // kh, w // kw
    P = np.zeros((ph * pw, h * w), np.float32)
    inv = 1.0 / (kh * kw)
    for i in range(ph):
        for j in range(pw):
            for di in range(kh):
                for dj in range(kw):
                    P[i * pw + j, (i * kh + di) * w + (j * kw + dj)] = inv
    return jnp.asarray(P)


def im2col(x_nhwc, kh, kw, stride, pad):
    n, h, w, c = x_nhwc.shape
    xp = jnp.pad(x_nhwc, ((0, 0), (pad, pad), (pad, pad), (0, 0)))
    ho = (h + 2 * pad - kh) // stride + 1
    wo = (w + 2 * pad - kw) // stride + 1
    cols = []
    for dy in range(kh):
        for dx in range(kw):
            cols.append(
                xp[:, dy:dy + stride * ho:stride, dx:dx + stride * wo:stride, :]
            )
    patches = jnp.stack(cols, axis=3)                 # (n, ho, wo, kh*kw, c)
    patches = patches.reshape(n * ho * wo, kh * kw * c)
    return patches, (n, ho, wo)


# ---------------------------------------------------------------------------
# Forward pass
# ---------------------------------------------------------------------------
def two_tower_forward(params, img_nchw):
    n, cin, h, w = img_nchw.shape
    c1 = params["w1"].shape[0]
    c2 = params["w2"].shape[0]
    assert 9 * cin <= KPAD and c1 <= CPAD and c2 <= CPAD

    # conv1 im2col (trace-time glue), lane-dense zero padding of K to 128
    x = jnp.transpose(img_nchw, (0, 2, 3, 1))                    # NCHW -> NHWC
    patches, (_, h1, w1sp) = im2col(x, 3, 3, 2, 1)               # (n*HW1, 9*cin)
    k1 = patches.shape[1]
    patches = patches.reshape(n, h1 * w1sp, k1)
    patches = jnp.pad(patches, ((0, 0), (0, 0), (0, KPAD - k1)))

    # conv1 weights -> (KPAD, CPAD); zero pad keeps padded lanes exactly 0
    w1m = jnp.transpose(params["w1"], (2, 3, 1, 0)).reshape(k1, c1)
    w1m = jnp.pad(w1m, ((0, KPAD - k1), (0, CPAD - c1)))
    b1 = jnp.pad(params["b1"], (0, CPAD - c1)).reshape(1, CPAD)

    # conv2 weights per (dy,dx) tap -> (9, CPAD, CPAD)
    w2t = jnp.transpose(params["w2"], (2, 3, 1, 0)).reshape(9, c1, c2)
    w2t = jnp.pad(w2t, ((0, 0), (0, CPAD - c1), (0, CPAD - c2)))
    b2 = jnp.pad(params["b2"], (0, CPAD - c2)).reshape(1, CPAD)

    # constant gather / pooling matrices
    h2 = (h1 + 2 - 3) // 2 + 1
    w2sp = (w1sp + 2 - 3) // 2 + 1
    s2 = _build_conv_gather(h1, w1sp, h2, w2sp, 3, 3, 2, 1)      # (9, HW2, HW1)
    pool = _build_pool_matrix(h2, w2sp, 4, 4)                    # (ph*pw, HW2)
    ph, pw = h2 // 4, w2sp // 4
    hw1, hw2, npool = h1 * w1sp, h2 * w2sp, ph * pw

    out = pl.pallas_call(
        _fused_tower_kernel,
        out_shape=jax.ShapeDtypeStruct((n, npool, c2), jnp.float32),
        grid_spec=pltpu.PrefetchScalarGridSpec(
            num_scalar_prefetch=0,
            grid=(n,),
            in_specs=[
                pl.BlockSpec((1, hw1, KPAD), lambda b: (b, 0, 0)),   # patches
                pl.BlockSpec((KPAD, CPAD), lambda b: (0, 0)),        # w1
                pl.BlockSpec((1, CPAD), lambda b: (0, 0)),           # b1
                pl.BlockSpec((9, hw2, hw1), lambda b: (0, 0, 0)),    # gather S2
                pl.BlockSpec((9, CPAD, CPAD), lambda b: (0, 0, 0)),  # w2 taps
                pl.BlockSpec((1, CPAD), lambda b: (0, 0)),           # b2
                pl.BlockSpec((npool, hw2), lambda b: (0, 0)),        # pool mat
            ],
            out_specs=pl.BlockSpec((1, npool, c2), lambda b: (b, 0, 0)),
        ),
        compiler_params=pltpu.CompilerParams(
            dimension_semantics=("parallel",),          # shards batch on v7x 2 TCs
            vmem_limit_bytes=32 * 1024 * 1024,          # well above ~3 MiB usage
        ),
    )(patches, w1m, b1, s2, w2t, b2, pool)

    # pooled rows are NHWC spatial-major; emit torch's NCHW flatten order
    out = out.reshape(n, ph, pw, c2).transpose(0, 3, 1, 2)   # no-op when ph=pw=1
    return out.reshape(n, -1)


# ---------------------------------------------------------------------------
# Params + pure-JAX reference (correctness check only)
# ---------------------------------------------------------------------------
def init_params(key, cin=4, c1=8, c2=16):
    k1, k2, k3, k4 = jax.random.split(key, 4)
    return {
        "w1": 0.1 * jax.random.normal(k1, (c1, cin, 3, 3), jnp.float32),
        "b1": 0.1 * jax.random.normal(k2, (c1,), jnp.float32),
        "w2": 0.1 * jax.random.normal(k3, (c2, c1, 3, 3), jnp.float32),
        "b2": 0.1 * jax.random.normal(k4, (c2,), jnp.float32),
    }


def _ref_forward(params, img_nchw):
    def conv_ref(x, wgt, b, stride, pad):
        cout, cin, kh, kw = wgt.shape
        patches, (n, ho, wo) = im2col(x, kh, kw, stride, pad)
        wmat = jnp.transpose(wgt, (2, 3, 1, 0)).reshape(kh * kw * cin, cout)
        o = jnp.maximum(patches @ wmat + b[None, :], 0.0)
        return o.reshape(n, ho, wo, cout)

    x = jnp.transpose(img_nchw, (0, 2, 3, 1))
    x = conv_ref(x, params["w1"], params["b1"], 2, 1)
    fm = conv_ref(x, params["w2"], params["b2"], 2, 1)
    n, hf, wf, c = fm.shape
    ph, pw = hf // 4, wf // 4
    pooled = fm.reshape(n, ph, 4, pw, 4, c).mean(axis=(2, 4))    # (n,ph,pw,c)
    pooled = pooled.transpose(0, 3, 1, 2)
    return pooled.reshape(n, -1)


if __name__ == "__main__":
    key = jax.random.PRNGKey(0)
    pkey, xkey = jax.random.split(key)
    params = init_params(pkey)
    img = jax.random.normal(xkey, (2, 4, 16, 16), jnp.float32)    # NCHW

    fwd = jax.jit(two_tower_forward)
    out = jax.block_until_ready(fwd(params, img))
    ref = _ref_forward(params, img)

    assert out.shape == (2, 16), out.shape
    err = float(jnp.max(jnp.abs(out - ref)))
    assert jnp.allclose(out, ref, atol=1e-4, rtol=1e-4), err
    print("KERNEL_OK")
</pallas_src>

<mosaic_0001>
module attributes {stable_mosaic.version = 11 : i64} {
  func.func @_fused_tower_kernel(%arg0: i32, %arg1: memref<1x64x128xf32, #tpu.memory_space<vmem>>, %arg2: memref<128x128xf32, #tpu.memory_space<vmem>>, %arg3: memref<1x128xf32, #tpu.memory_space<vmem>>, %arg4: memref<9x16x64xf32, #tpu.memory_space<vmem>>, %arg5: memref<9x128x128xf32, #tpu.memory_space<vmem>>, %arg6: memref<1x128xf32, #tpu.memory_space<vmem>>, %arg7: memref<1x16xf32, #tpu.memory_space<vmem>>, %arg8: memref<1x1x16xf32, #tpu.memory_space<vmem>>) attributes {dimension_semantics = [#tpu.dimension_semantics<parallel>], iteration_bounds = array<i64: 2>, scalar_prefetch = 0 : i64, scratch_operands = 0 : i64, tpu.core_type = #tpu.core_type<tc>, window_params = [{transform_indices = @transform_0, window_bounds = array<i64: 1, 64, 128>}, {pipeline_mode = #tpu.pipeline_mode<synchronous>, transform_indices = @transform_1, window_bounds = array<i64: 128, 128>}, {pipeline_mode = #tpu.pipeline_mode<synchronous>, transform_indices = @transform_2, window_bounds = array<i64: 1, 128>}, {pipeline_mode = #tpu.pipeline_mode<synchronous>, transform_indices = @transform_3, window_bounds = array<i64: 9, 16, 64>}, {pipeline_mode = #tpu.pipeline_mode<synchronous>, transform_indices = @transform_4, window_bounds = array<i64: 9, 128, 128>}, {pipeline_mode = #tpu.pipeline_mode<synchronous>, transform_indices = @transform_5, window_bounds = array<i64: 1, 128>}, {pipeline_mode = #tpu.pipeline_mode<synchronous>, transform_indices = @transform_6, window_bounds = array<i64: 1, 16>}, {transform_indices = @transform_7, window_bounds = array<i64: 1, 1, 16>}]} {
    %c0 = arith.constant 0 : index
    %c0_0 = arith.constant 0 : index
    %c0_1 = arith.constant 0 : index
    %0 = vector.load %arg1[%c0, %c0_0, %c0_1] : memref<1x64x128xf32, #tpu.memory_space<vmem>>, vector<1x64x128xf32>
    %1 = vector.shape_cast %0 : vector<1x64x128xf32> to vector<64x128xf32>
    %c0_2 = arith.constant 0 : index
    %c0_3 = arith.constant 0 : index
    %2 = vector.load %arg2[%c0_2, %c0_3] : memref<128x128xf32, #tpu.memory_space<vmem>>, vector<128x128xf32>
    %cst = arith.constant dense<0.000000e+00> : vector<64x128xf32>
    %3 = tpu.matmul %1, %2, %cst {dimension_numbers = #tpu.dot_dimension_numbers<[1], [0], [0], [1], [0, 0, 1, 1], [], []>} : vector<64x128xf32>, vector<128x128xf32>, vector<64x128xf32> -> vector<64x128xf32>
    %c0_4 = arith.constant 0 : index
    %c0_5 = arith.constant 0 : index
    %4 = vector.load %arg3[%c0_4, %c0_5] : memref<1x128xf32, #tpu.memory_space<vmem>>, vector<1x128xf32>
    %5 = vector.broadcast %4 : vector<1x128xf32> to vector<64x128xf32>
    %6 = arith.addf %3, %5 : vector<64x128xf32>
    %cst_6 = arith.constant 0.000000e+00 : f32
    %7 = vector.broadcast %cst_6 : f32 to vector<64x128xf32>
    %8 = arith.maximumf %6, %7 : vector<64x128xf32>
    %cst_7 = arith.constant 0.000000e+00 : f32
    %9 = vector.broadcast %cst_7 : f32 to vector<16x128xf32>
    %c0_8 = arith.constant 0 : index
    %c0_9 = arith.constant 0 : index
    %c0_10 = arith.constant 0 : index
    %10 = vector.load %arg4[%c0_8, %c0_9, %c0_10] : memref<9x16x64xf32, #tpu.memory_space<vmem>>, vector<1x16x64xf32>
    %11 = vector.shape_cast %10 : vector<1x16x64xf32> to vector<16x64xf32>
    %cst_11 = arith.constant dense<0.000000e+00> : vector<16x128xf32>
    %12 = tpu.matmul %11, %8, %cst_11 {dimension_numbers = #tpu.dot_dimension_numbers<[1], [0], [0], [1], [0, 0, 1, 1], [], []>} : vector<16x64xf32>, vector<64x128xf32>, vector<16x128xf32> -> vector<16x128xf32>
    %c0_12 = arith.constant 0 : index
    %c0_13 = arith.constant 0 : index
    %c0_14 = arith.constant 0 : index
    %13 = vector.load %arg5[%c0_12, %c0_13, %c0_14] : memref<9x128x128xf32, #tpu.memory_space<vmem>>, vector<1x128x128xf32>
    %14 = vector.shape_cast %13 : vector<1x128x128xf32> to vector<128x128xf32>
    %cst_15 = arith.constant dense<0.000000e+00> : vector<16x128xf32>
    %15 = tpu.matmul %12, %14, %cst_15 {dimension_numbers = #tpu.dot_dimension_numbers<[1], [0], [0], [1], [0, 0, 1, 1], [], []>} : vector<16x128xf32>, vector<128x128xf32>, vector<16x128xf32> -> vector<16x128xf32>
    %16 = arith.addf %9, %15 : vector<16x128xf32>
    %c1 = arith.constant 1 : index
    %c0_16 = arith.constant 0 : index
    %c0_17 = arith.constant 0 : index
    %17 = vector.load %arg4[%c1, %c0_16, %c0_17] : memref<9x16x64xf32, #tpu.memory_space<vmem>>, vector<1x16x64xf32>
    %18 = vector.shape_cast %17 : vector<1x16x64xf32> to vector<16x64xf32>
    %cst_18 = arith.constant dense<0.000000e+00> : vector<16x128xf32>
    %19 = tpu.matmul %18, %8, %cst_18 {dimension_numbers = #tpu.dot_dimension_numbers<[1], [0], [0], [1], [0, 0, 1, 1], [], []>} : vector<16x64xf32>, vector<64x128xf32>, vector<16x128xf32> -> vector<16x128xf32>
    %c1_19 = arith.constant 1 : index
    %c0_20 = arith.constant 0 : index
    %c0_21 = arith.constant 0 : index
    %20 = vector.load %arg5[%c1_19, %c0_20, %c0_21] : memref<9x128x128xf32, #tpu.memory_space<vmem>>, vector<1x128x128xf32>
    %21 = vector.shape_cast %20 : vector<1x128x128xf32> to vector<128x128xf32>
    %cst_22 = arith.constant dense<0.000000e+00> : vector<16x128xf32>
    %22 = tpu.matmul %19, %21, %cst_22 {dimension_numbers = #tpu.dot_dimension_numbers<[1], [0], [0], [1], [0, 0, 1, 1], [], []>} : vector<16x128xf32>, vector<128x128xf32>, vector<16x128xf32> -> vector<16x128xf32>
    %23 = arith.addf %16, %22 : vector<16x128xf32>
    %c2 = arith.constant 2 : index
    %c0_23 = arith.constant 0 : index
    %c0_24 = arith.constant 0 : index
    %24 = vector.load %arg4[%c2, %c0_23, %c0_24] : memref<9x16x64xf32, #tpu.memory_space<vmem>>, vector<1x16x64xf32>
    %25 = vector.shape_cast %24 : vector<1x16x64xf32> to vector<16x64xf32>
    %cst_25 = arith.constant dense<0.000000e+00> : vector<16x128xf32>
    %26 = tpu.matmul %25, %8, %cst_25 {dimension_numbers = #tpu.dot_dimension_numbers<[1], [0], [0], [1], [0, 0, 1, 1], [], []>} : vector<16x64xf32>, vector<64x128xf32>, vector<16x128xf32> -> vector<16x128xf32>
    %c2_26 = arith.constant 2 : index
    %c0_27 = arith.constant 0 : index
    %c0_28 = arith.constant 0 : index
    %27 = vector.load %arg5[%c2_26, %c0_27, %c0_28] : memref<9x128x128xf32, #tpu.memory_space<vmem>>, vector<1x128x128xf32>
    %28 = vector.shape_cast %27 : vector<1x128x128xf32> to vector<128x128xf32>
    %cst_29 = arith.constant dense<0.000000e+00> : vector<16x128xf32>
    %29 = tpu.matmul %26, %28, %cst_29 {dimension_numbers = #tpu.dot_dimension_numbers<[1], [0], [0], [1], [0, 0, 1, 1], [], []>} : vector<16x128xf32>, vector<128x128xf32>, vector<16x128xf32> -> vector<16x128xf32>
    %30 = arith.addf %23, %29 : vector<16x128xf32>
    %c3 = arith.constant 3 : index
    %c0_30 = arith.constant 0 : index
    %c0_31 = arith.constant 0 : index
    %31 = vector.load %arg4[%c3, %c0_30, %c0_31] : memref<9x16x64xf32, #tpu.memory_space<vmem>>, vector<1x16x64xf32>
    %32 = vector.shape_cast %31 : vector<1x16x64xf32> to vector<16x64xf32>
    %cst_32 = arith.constant dense<0.000000e+00> : vector<16x128xf32>
    %33 = tpu.matmul %32, %8, %cst_32 {dimension_numbers = #tpu.dot_dimension_numbers<[1], [0], [0], [1], [0, 0, 1, 1], [], []>} : vector<16x64xf32>, vector<64x128xf32>, vector<16x128xf32> -> vector<16x128xf32>
    %c3_33 = arith.constant 3 : index
    %c0_34 = arith.constant 0 : index
    %c0_35 = arith.constant 0 : index
    %34 = vector.load %arg5[%c3_33, %c0_34, %c0_35] : memref<9x128x128xf32, #tpu.memory_space<vmem>>, vector<1x128x128xf32>
    %35 = vector.shape_cast %34 : vector<1x128x128xf32> to vector<128x128xf32>
    %cst_36 = arith.constant dense<0.000000e+00> : vector<16x128xf32>
    %36 = tpu.matmul %33, %35, %cst_36 {dimension_numbers = #tpu.dot_dimension_numbers<[1], [0], [0], [1], [0, 0, 1, 1], [], []>} : vector<16x128xf32>, vector<128x128xf32>, vector<16x128xf32> -> vector<16x128xf32>
    %37 = arith.addf %30, %36 : vector<16x128xf32>
    %c4 = arith.constant 4 : index
    %c0_37 = arith.constant 0 : index
    %c0_38 = arith.constant 0 : index
    %38 = vector.load %arg4[%c4, %c0_37, %c0_38] : memref<9x16x64xf32, #tpu.memory_space<vmem>>, vector<1x16x64xf32>
    %39 = vector.shape_cast %38 : vector<1x16x64xf32> to vector<16x64xf32>
    %cst_39 = arith.constant dense<0.000000e+00> : vector<16x128xf32>
    %40 = tpu.matmul %39, %8, %cst_39 {dimension_numbers = #tpu.dot_dimension_numbers<[1], [0], [0], [1], [0, 0, 1, 1], [], []>} : vector<16x64xf32>, vector<64x128xf32>, vector<16x128xf32> -> vector<16x128xf32>
    %c4_40 = arith.constant 4 : index
    %c0_41 = arith.constant 0 : index
    %c0_42 = arith.constant 0 : index
    %41 = vector.load %arg5[%c4_40, %c0_41, %c0_42] : memref<9x128x128xf32, #tpu.memory_space<vmem>>, vector<1x128x128xf32>
    %42 = vector.shape_cast %41 : vector<1x128x128xf32> to vector<128x128xf32>
    %cst_43 = arith.constant dense<0.000000e+00> : vector<16x128xf32>
    %43 = tpu.matmul %40, %42, %cst_43 {dimension_numbers = #tpu.dot_dimension_numbers<[1], [0], [0], [1], [0, 0, 1, 1], [], []>} : vector<16x128xf32>, vector<128x128xf32>, vector<16x128xf32> -> vector<16x128xf32>
    %44 = arith.addf %37, %43 : vector<16x128xf32>
    %c5 = arith.constant 5 : index
    %c0_44 = arith.constant 0 : index
    %c0_45 = arith.constant 0 : index
    %45 = vector.load %arg4[%c5, %c0_44, %c0_45] : memref<9x16x64xf32, #tpu.memory_space<vmem>>, vector<1x16x64xf32>
    %46 = vector.shape_cast %45 : vector<1x16x64xf32> to vector<16x64xf32>
    %cst_46 = arith.constant dense<0.000000e+00> : vector<16x128xf32>
    %47 = tpu.matmul %46, %8, %cst_46 {dimension_numbers = #tpu.dot_dimension_numbers<[1], [0], [0], [1], [0, 0, 1, 1], [], []>} : vector<16x64xf32>, vector<64x128xf32>, vector<16x128xf32> -> vector<16x128xf32>
    %c5_47 = arith.constant 5 : index
    %c0_48 = arith.constant 0 : index
    %c0_49 = arith.constant 0 : index
    %48 = vector.load %arg5[%c5_47, %c0_48, %c0_49] : memref<9x128x128xf32, #tpu.memory_space<vmem>>, vector<1x128x128xf32>
    %49 = vector.shape_cast %48 : vector<1x128x128xf32> to vector<128x128xf32>
    %cst_50 = arith.constant dense<0.000000e+00> : vector<16x128xf32>
    %50 = tpu.matmul %47, %49, %cst_50 {dimension_numbers = #tpu.dot_dimension_numbers<[1], [0], [0], [1], [0, 0, 1, 1], [], []>} : vector<16x128xf32>, vector<128x128xf32>, vector<16x128xf32> -> vector<16x128xf32>
    %51 = arith.addf %44, %50 : vector<16x128xf32>
    %c6 = arith.constant 6 : index
    %c0_51 = arith.constant 0 : index
    %c0_52 = arith.constant 0 : index
    %52 = vector.load %arg4[%c6, %c0_51, %c0_52] : memref<9x16x64xf32, #tpu.memory_space<vmem>>, vector<1x16x64xf32>
    %53 = vector.shape_cast %52 : vector<1x16x64xf32> to vector<16x64xf32>
    %cst_53 = arith.constant dense<0.000000e+00> : vector<16x128xf32>
    %54 = tpu.matmul %53, %8, %cst_53 {dimension_numbers = #tpu.dot_dimension_numbers<[1], [0], [0], [1], [0, 0, 1, 1], [], []>} : vector<16x64xf32>, vector<64x128xf32>, vector<16x128xf32> -> vector<16x128xf32>
    %c6_54 = arith.constant 6 : index
    %c0_55 = arith.constant 0 : index
    %c0_56 = arith.constant 0 : index
    %55 = vector.load %arg5[%c6_54, %c0_55, %c0_56] : memref<9x128x128xf32, #tpu.memory_space<vmem>>, vector<1x128x128xf32>
    %56 = vector.shape_cast %55 : vector<1x128x128xf32> to vector<128x128xf32>
    %cst_57 = arith.constant dense<0.000000e+00> : vector<16x128xf32>
    %57 = tpu.matmul %54, %56, %cst_57 {dimension_numbers = #tpu.dot_dimension_numbers<[1], [0], [0], [1], [0, 0, 1, 1], [], []>} : vector<16x128xf32>, vector<128x128xf32>, vector<16x128xf32> -> vector<16x128xf32>
    %58 = arith.addf %51, %57 : vector<16x128xf32>
    %c7 = arith.constant 7 : index
    %c0_58 = arith.constant 0 : index
    %c0_59 = arith.constant 0 : index
    %59 = vector.load %arg4[%c7, %c0_58, %c0_59] : memref<9x16x64xf32, #tpu.memory_space<vmem>>, vector<1x16x64xf32>
    %60 = vector.shape_cast %59 : vector<1x16x64xf32> to vector<16x64xf32>
    %cst_60 = arith.constant dense<0.000000e+00> : vector<16x128xf32>
    %61 = tpu.matmul %60, %8, %cst_60 {dimension_numbers = #tpu.dot_dimension_numbers<[1], [0], [0], [1], [0, 0, 1, 1], [], []>} : vector<16x64xf32>, vector<64x128xf32>, vector<16x128xf32> -> vector<16x128xf32>
    %c7_61 = arith.constant 7 : index
    %c0_62 = arith.constant 0 : index
    %c0_63 = arith.constant 0 : index
    %62 = vector.load %arg5[%c7_61, %c0_62, %c0_63] : memref<9x128x128xf32, #tpu.memory_space<vmem>>, vector<1x128x128xf32>
    %63 = vector.shape_cast %62 : vector<1x128x128xf32> to vector<128x128xf32>
    %cst_64 = arith.constant dense<0.000000e+00> : vector<16x128xf32>
    %64 = tpu.matmul %61, %63, %cst_64 {dimension_numbers = #tpu.dot_dimension_numbers<[1], [0], [0], [1], [0, 0, 1, 1], [], []>} : vector<16x128xf32>, vector<128x128xf32>, vector<16x128xf32> -> vector<16x128xf32>
    %65 = arith.addf %58, %64 : vector<16x128xf32>
    %c8 = arith.constant 8 : index
    %c0_65 = arith.constant 0 : index
    %c0_66 = arith.constant 0 : index
    %66 = vector.load %arg4[%c8, %c0_65, %c0_66] : memref<9x16x64xf32, #tpu.memory_space<vmem>>, vector<1x16x64xf32>
    %67 = vector.shape_cast %66 : vector<1x16x64xf32> to vector<16x64xf32>
    %cst_67 = arith.constant dense<0.000000e+00> : vector<16x128xf32>
    %68 = tpu.matmul %67, %8, %cst_67 {dimension_numbers = #tpu.dot_dimension_numbers<[1], [0], [0], [1], [0, 0, 1, 1], [], []>} : vector<16x64xf32>, vector<64x128xf32>, vector<16x128xf32> -> vector<16x128xf32>
    %c8_68 = arith.constant 8 : index
    %c0_69 = arith.constant 0 : index
    %c0_70 = arith.constant 0 : index
    %69 = vector.load %arg5[%c8_68, %c0_69, %c0_70] : memref<9x128x128xf32, #tpu.memory_space<vmem>>, vector<1x128x128xf32>
    %70 = vector.shape_cast %69 : vector<1x128x128xf32> to vector<128x128xf32>
    %cst_71 = arith.constant dense<0.000000e+00> : vector<16x128xf32>
    %71 = tpu.matmul %68, %70, %cst_71 {dimension_numbers = #tpu.dot_dimension_numbers<[1], [0], [0], [1], [0, 0, 1, 1], [], []>} : vector<16x128xf32>, vector<128x128xf32>, vector<16x128xf32> -> vector<16x128xf32>
    %72 = arith.addf %65, %71 : vector<16x128xf32>
    %c0_72 = arith.constant 0 : index
    %c0_73 = arith.constant 0 : index
    %73 = vector.load %arg6[%c0_72, %c0_73] : memref<1x128xf32, #tpu.memory_space<vmem>>, vector<1x128xf32>
    %74 = vector.broadcast %73 : vector<1x128xf32> to vector<16x128xf32>
    %75 = arith.addf %72, %74 : vector<16x128xf32>
    %cst_74 = arith.constant 0.000000e+00 : f32
    %76 = vector.broadcast %cst_74 : f32 to vector<16x128xf32>
    %77 = arith.maximumf %75, %76 : vector<16x128xf32>
    %c0_75 = arith.constant 0 : index
    %c0_76 = arith.constant 0 : index
    %78 = vector.load %arg7[%c0_75, %c0_76] : memref<1x16xf32, #tpu.memory_space<vmem>>, vector<1x16xf32>
    %cst_77 = arith.constant dense<0.000000e+00> : vector<1x128xf32>
    %79 = tpu.matmul %78, %77, %cst_77 {dimension_numbers = #tpu.dot_dimension_numbers<[1], [0], [0], [1], [0, 0, 1, 1], [], []>} : vector<1x16xf32>, vector<16x128xf32>, vector<1x128xf32> -> vector<1x128xf32>
    %80 = vector.extract_strided_slice %79 {offsets = [0, 0], sizes = [1, 16], strides = [1, 1]} : vector<1x128xf32> to vector<1x16xf32>
    %c0_78 = arith.constant 0 : index
    %c0_79 = arith.constant 0 : index
    %c0_80 = arith.constant 0 : index
    %81 = vector.load %arg8[%c0_78, %c0_79, %c0_80] : memref<1x1x16xf32, #tpu.memory_space<vmem>>, vector<1x1x16xf32>
    %82 = vector.shape_cast %81 : vector<1x1x16xf32> to vector<1x16xf32>
    %83 = vector.shape_cast %80 : vector<1x16xf32> to vector<1x1x16xf32>
    tpu.vector_store %arg8[%c0_78, %c0_79, %c0_80], %83 {strides = array<i32>} : memref<1x1x16xf32, #tpu.memory_space<vmem>>, vector<1x1x16xf32>,
    return
  }
  func.func @transform_0(%arg0: i32) -> (i32, i32, i32) {
    %c0_i32 = arith.constant 0 : i32
    %c0_i32_0 = arith.constant 0 : i32
    %c0_i32_1 = arith.constant 0 : i32
    return %arg0, %c0_i32, %c0_i32_0 : i32, i32, i32
  }
  func.func @transform_1(%arg0: i32) -> (i32, i32) {
    %c0_i32 = arith.constant 0 : i32
    %c0_i32_0 = arith.constant 0 : i32
    %c0_i32_1 = arith.constant 0 : i32
    return %c0_i32, %c0_i32_0 : i32, i32
  }
  func.func @transform_2(%arg0: i32) -> (i32, i32) {
    %c0_i32 = arith.constant 0 : i32
    %c0_i32_0 = arith.constant 0 : i32
    %c0_i32_1 = arith.constant 0 : i32
    return %c0_i32, %c0_i32_0 : i32, i32
  }
  func.func @transform_3(%arg0: i32) -> (i32, i32, i32) {
    %c0_i32 = arith.constant 0 : i32
    %c0_i32_0 = arith.constant 0 : i32
    %c0_i32_1 = arith.constant 0 : i32
    %c0_i32_2 = arith.constant 0 : i32
    return %c0_i32, %c0_i32_0, %c0_i32_1 : i32, i32, i32
  }
  func.func @transform_4(%arg0: i32) -> (i32, i32, i32) {
    %c0_i32 = arith.constant 0 : i32
    %c0_i32_0 = arith.constant 0 : i32
    %c0_i32_1 = arith.constant 0 : i32
    %c0_i32_2 = arith.constant 0 : i32
    return %c0_i32, %c0_i32_0, %c0_i32_1 : i32, i32, i32
  }
  func.func @transform_5(%arg0: i32) -> (i32, i32) {
    %c0_i32 = arith.constant 0 : i32
    %c0_i32_0 = arith.constant 0 : i32
    %c0_i32_1 = arith.constant 0 : i32
    return %c0_i32, %c0_i32_0 : i32, i32
  }
  func.func @transform_6(%arg0: i32) -> (i32, i32) {
    %c0_i32 = arith.constant 0 : i32
    %c0_i32_0 = arith.constant 0 : i32
    %c0_i32_1 = arith.constant 0 : i32
    return %c0_i32, %c0_i32_0 : i32, i32
  }
  func.func @transform_7(%arg0: i32) -> (i32, i32, i32) {
    %c0_i32 = arith.constant 0 : i32
    %c0_i32_0 = arith.constant 0 : i32
    %c0_i32_1 = arith.constant 0 : i32
    return %arg0, %c0_i32, %c0_i32_0 : i32, i32, i32
  }
}

</mosaic_0001>

<bundles_post_ra>
// kernel: two_tower_forward.1
= control target key start
LH: loop header
LB: loop body
LE: loop exit
PB: predicated region body
PF: predicated region fallthrough
CT: control target
= control target key end

     0   :  { %12 = vsyncpa [#allocation3], 0  ;;  %s2174_s0 = inlined_call_operand.vmem [shape: f32[2,64,128], index: 0, kind: input, shape index: {}]   ;;  %s2175_s1 = inlined_call_operand.vmem [shape: f32[128,128], index: 1, kind: input, shape index: {}]   ;;  %s2176_s2 = inlined_call_operand.vmem [shape: f32[1,128], index: 2, kind: input, shape index: {}]   ;;  %s2177_s3 = inlined_call_operand.vmem [shape: f32[9,16,64], index: 3, kind: input, shape index: {}]   ;;  %s2178_s4 = inlined_call_operand.vmem [shape: f32[9,128,128], index: 4, kind: input, shape index: {}]   ;;  %s2179_s5 = inlined_call_operand.vmem [shape: f32[1,128], index: 5, kind: input, shape index: {}]   ;;  %s2180_s6 = inlined_call_operand.vmem [shape: f32[1,16], index: 6, kind: input, shape index: {}]   ;;  %s2181_s7 = inlined_call_operand.hbm [shape: f32[2,1,16], index: 7, kind: output, shape index: {}]  }
   0x1   :  { %14 = vsyncpa [#allocation3 + $0x1], 0  ;;  %s1434_s24 = smov 0   ;;  %s1436_s25 = smov 0  }
   0x2   :  { %s1438_s26 = smov 0   ;;  %s1440_s27 = smov 0  }
   0x3 LB: > { %s1455_s28 = sadd.s32 4294967295, %s1392_s27   ;;  %s1117_s29 = sadd.s32 4294967294, %s1392_s27   ;;  %s1392_s27 = sphi %s1440_s27, %s2187_s27   ;;  %s1388_s26 = sphi %s1438_s26, %s2186_s26   ;;  %s1384_s25 = sphi %s1436_s25, %s2185_s25   ;;  %s1380_s24 = sphi %s1434_s24, %s2184_s24  }
   0x4   : > { %s1459_s30 = sadd.s32 1, %s1392_s27   ;;  %s179_s8 = sadd.s32 1, %s1388_s26 }
   0x5   : > { %s176_s9 = ssub.s32 %s1392_s27, %s1459_s30  ;;  %p189_p0 = scmp.ne.s32.totalorder %s1388_s26, %s1384_s25 }
   0x6   : > { %p177_p1 = scmp.eq.s32.totalorder %s176_s9, 0  ;;  %p190_p2 = scmp.eq.s32.totalorder %s1455_s28, 1 }
   0x7   : > { %p195_p3 = scmp.ne.s32.totalorder %s1384_s25, %s1380_s24  ;;  %p196_p4 = scmp.eq.s32.totalorder %s1117_s29, 1 }
   0x8   : > { %s1470_s10 = scalar_select %p177_p1, %s1388_s26, %s179_s8  }
   0x9   : > { %p1472_p5 = por %p190_p2, %p189_p0  ;;  %p1476_p6 = por %p196_p4, %p195_p3 }
   0xa   : > { %p1120_p7 = scmp.ge.s32.totalorder %s1392_s27, 1  ;;  %p240_p8 = scmp.lt.s32.totalorder %s1392_s27, 3 }
   0xc   : > { %p241_p9 = pnand %p1120_p7, %p240_p8 }
   0xd   : > { %p271_p10 = scmp.lt.s32.totalorder (!%p241_p9), %s1455_s28, 1  ;;  %s269_s16 = sand.u32 (!%p241_p9), 1, %s1384_s25  }
   0xe   : > { %244 = sbr.rel (%p241_p9) target bundleno = 992 (0x3e0), region = 48  ;;  %s270_s20 = scalar_lea.vmem (!%p241_p9), [#allocation2], %s269_s16 }
   0xf   : > { %s1060_s22 = sshll.u32 (!%p241_p9), %s270_s20, 4  ;;  %s1050_s23 = scalar_lea.sflag (!%p241_p9), [#allocation3], %s269_s16  ;;  %s1061_s22 = int_to_ptr.vmem [resolvable:$true] %s1060_s22 }
  0x13   : > { %v299_v0 = vld [vmem:[%s2175_s1 + $0x78] sm:$0xff]  ;;  %v298_v1 = vld [vmem:[%s2175_s1 + $0x70] sm:$0xff]  ;;  %v297_v2 = vld [vmem:[%s2175_s1 + $0x68] sm:$0xff]  ;;  %s272_s21 = scalar_select %p271_p10, %s1455_s28, 1  ;;  %vm355_vm0 = vcmask 523264   ;;  %vm1023_vm1 = vcmask 130048  }
  0x14   : > { %304 = vmatpush.msra.mxu0 %v299_v0  ;;  %v296_v3 = vld [vmem:[%s2175_s1 + $0x60] sm:$0xff]  ;;  %v295_v4 = vld [vmem:[%s2175_s1 + $0x58] sm:$0xff]  ;;  %v294_v5 = vld [vmem:[%s2175_s1 + $0x50] sm:$0xff]  ;;  %vm1047_vm2 = vcmask 122880  }
  0x15   : > { %v293_v6 = vld [vmem:[%s2175_s1 + $0x48] sm:$0xff]  ;;  %v292_v7 = vld [vmem:[%s2175_s1 + $0x40] sm:$0xff]  ;;  %v291_v8 = vld [vmem:[%s2175_s1 + $0x38] sm:$0xff]  ;;  %s1288_s9 = sshll.u32 %s272_s21, 6 }
  0x16   : > { %305 = vmatpush.msra.mxu0 %v298_v1  ;;  %v290_v9 = vld [vmem:[%s2175_s1 + $0x30] sm:$0xff]  ;;  %v289_v10 = vld [vmem:[%s2175_s1 + $0x28] sm:$0xff]  ;;  %v288_v11 = vld [vmem:[%s2175_s1 + $0x20] sm:$0xff]  ;;  %s275_s19 = scalar_lea.vmem %s2174_s0, %s1288_s9 }
  0x17   : > { %v287_v12 = vld [vmem:[%s2175_s1 + $0x18] sm:$0xff]  ;;  %v286_v13 = vld [vmem:[%s2175_s1 + $0x10] sm:$0xff]  ;;  %v285_v14 = vld [vmem:[%s2175_s1 + $0x8] sm:$0xff] }
  0x18   : > { %306 = vmatpush.msra.mxu0 %v297_v2  ;;  %v284_v15 = vld [vmem:[%s2175_s1] sm:$0xff]  ;;  %v277_v17 = vld [vmem:[%s275_s19 + $0x8] sm:$0xff]  ;;  %v278_v18 = vld [vmem:[%s275_s19 + $0x10] sm:$0xff] }
  0x19   : > { %v276_v16 = vld [vmem:[%s275_s19] sm:$0xff]  ;;  %v279_v19 = vld [vmem:[%s275_s19 + $0x18] sm:$0xff]  ;;  %v281_v21 = vld [vmem:[%s275_s19 + $0x28] sm:$0xff] }
  0x1a   : > { %307 = vmatpush.msra.mxu0 %v296_v3  ;;  %v280_v20 = vld [vmem:[%s275_s19 + $0x20] sm:$0xff]  ;;  %v282_v22 = vld [vmem:[%s275_s19 + $0x30] sm:$0xff]  ;;  %v283_v23 = vld [vmem:[%s275_s19 + $0x38] sm:$0xff]  ;;  %s1058_s19 = scalar_lea.hbm %s2181_s7, %s1455_s28  ;;  %s1350_s28 = scalar_lea.hbm %s2181_s7, 2 }
  0x1b   : > { %v1144_v24 = vld [vmem:[%s2178_s4 + $0xf8] sm:$0xff]  ;;  %v1143_v25 = vld [vmem:[%s2178_s4 + $0xf0] sm:$0xff]  ;;  %v1142_v27 = vld [vmem:[%s2178_s4 + $0xe8] sm:$0xff]  ;;  %s1062_s21 = sshll.u32 %s1058_s19, 4  ;;  %s1063_s21 = int_to_ptr.hbm [resolvable:$true] %s1062_s21 }
  0x1c   : > { %308 = vmatpush.msra.mxu0 %v295_v4  ;;  %450 = vmatpush.msra.mxu3 %v1144_v24  ;;  %v1141_v28 = vld [vmem:[%s2178_s4 + $0xe0] sm:$0xff]  ;;  %v1140_v29 = vld [vmem:[%s2178_s4 + $0xd8] sm:$0xff]  ;;  %v1139_v30 = vld [vmem:[%s2178_s4 + $0xd0] sm:$0xff]  ;;  %s1344_s29 = sshra.s32 %s1063_s21, 4  ;;  %s1345_s29 = int_to_ptr.hbm [resolvable:$true] %s1344_s29 }
  0x1d   : > { %v1138_v32 = vld [vmem:[%s2178_s4 + $0xc8] sm:$0xff]  ;;  %v1137_v33 = vld [vmem:[%s2178_s4 + $0xc0] sm:$0xff]  ;;  %v1136_v34 = vld [vmem:[%s2178_s4 + $0xb8] sm:$0xff]  ;;  %s1346_s8 = scalar_lea.hbm %s1345_s29, 1  ;;  %p1351_p0 = scmp.lt.s32.totalorder %s1345_s29, %s2181_s7 }
  0x1e   : > { %309 = vmatpush.msra.mxu0 %v294_v5  ;;  %451 = vmatpush.msra.mxu3 %v1143_v25  ;;  %v1135_v35 = vld [vmem:[%s2178_s4 + $0xb0] sm:$0xff]  ;;  %v1134_v37 = vld [vmem:[%s2178_s4 + $0xa8] sm:$0xff]  ;;  %v1133_v38 = vld [vmem:[%s2178_s4 + $0xa0] sm:$0xff]  ;;  %p1347_p11 = scmp.ne.s32.totalorder %s1345_s29, %s1346_s8  ;;  %p1352_p1 = scmp.lt.s32.totalorder %s1350_s28, %s1346_s8 }
  0x1f   : > { %v1132_v39 = vld [vmem:[%s2178_s4 + $0x98] sm:$0xff]  ;;  %v1131_v40 = vld [vmem:[%s2178_s4 + $0x90] sm:$0xff]  ;;  %v1130_v42 = vld [vmem:[%s2178_s4 + $0x88] sm:$0xff] }
  0x20   : > { %310 = vmatpush.msra.mxu0 %v293_v6  ;;  %452 = vmatpush.msra.mxu3 %v1142_v27  ;;  %v1129_v43 = vld [vmem:[%s2178_s4 + $0x80] sm:$0xff]  ;;  %v1125_v2 = vld [vmem:[%s2177_s3 + $0x10] sm:$0xff]  ;;  %v354_v3 = vld [vmem:[%s2177_s3 + $0x8] sm:$0xff]  ;;  %p1348_p12 = pnand %p1347_p11, %p1472_p5  ;;  %p1353_p2 = por %p1352_p1, %p1351_p0 }
  0x21   : > { %v1328_v47 = vld [vmem:[%s2176_s2] ss:$0 sm:$0xff]  ;;  %v1126_v4 = vld [vmem:[%s2177_s3 + $0x18] sm:$0xff]  ;;  %v395_v25 = vld [vmem:[%s2178_s4 + $0x50] sm:$0xff] }
  0x22   : > { %311 = vmatpush.msra.mxu0 %v292_v7  ;;  %453 = vmatpush.msra.mxu3 %v1141_v28  ;;  %v353_v1 = vld [vmem:[%s2177_s3] sm:$0xff]  ;;  %v1164_v5 = vld [vmem:[%s2178_s4 + $0x178] sm:$0xff]  ;;  %v1163_v7 = vld [vmem:[%s2178_s4 + $0x170] sm:$0xff]  ;;  %p1349_p13 = pneg %p1348_p12 }
  0x23   : > { %v1145_v6 = vld [vmem:[%s2177_s3 + $0x20] sm:$0xff]  ;;  %v1152_v24 = vld [vmem:[%s2178_s4 + $0x118] sm:$0xff]  ;;  %v394_v27 = vld [vmem:[%s2178_s4 + $0x48] sm:$0xff] }
  0x24   : > { %312 = vmatpush.msra.mxu0 %v291_v8  ;;  %454 = vmatpush.msra.mxu3 %v1140_v29  ;;  %v1162_v8 = vld [vmem:[%s2178_s4 + $0x168] sm:$0xff]  ;;  %v393_v29 = vld [vmem:[%s2178_s4 + $0x40] sm:$0xff]  ;;  %p1354_p3 = pnand %p1353_p2, %p1349_p13 }
  0x25   : > { %v1150_v28 = vld [vmem:[%s2178_s4 + $0x108] sm:$0xff] }
  0x26   : > { %313 = vmatpush.msra.mxu0 %v290_v9  ;;  %455 = vmatpush.msra.mxu3 %v1139_v30  ;;  %v1161_v9 = vld [vmem:[%s2178_s4 + $0x160] sm:$0xff] }
  0x27   : > { %v1149_v30 = vld [vmem:[%s2178_s4 + $0x100] sm:$0xff] }
  0x28   : > { %314 = vmatpush.msra.mxu0 %v289_v10  ;;  %456 = vmatpush.msra.mxu3 %v1138_v32  ;;  %v1160_v10 = vld [vmem:[%s2178_s4 + $0x158] sm:$0xff]  ;;  %v391_v32 = vld [vmem:[%s2178_s4 + $0x30] sm:$0xff] }
  0x2a   : > { %315 = vmatpush.msra.mxu0 %v288_v11  ;;  %457 = vmatpush.msra.mxu3 %v1137_v33  ;;  %v1146_v11 = vld [vmem:[%s2177_s3 + $0x28] sm:$0xff] }
  0x2b   : > { %v390_v33 = vld [vmem:[%s2178_s4 + $0x28] sm:$0xff] }
  0x2c   : > { %316 = vmatpush.msra.mxu0 %v287_v12  ;;  %458 = vmatpush.msra.mxu3 %v1136_v34  ;;  %v1159_v12 = vld [vmem:[%s2178_s4 + $0x150] sm:$0xff]  ;;  %v389_v34 = vld [vmem:[%s2178_s4 + $0x20] sm:$0xff] }
  0x2e   : > { %317 = vmatpush.msra.mxu0 %v286_v13  ;;  %459 = vmatpush.msra.mxu3 %v1135_v35  ;;  %v1158_v13 = vld [vmem:[%s2178_s4 + $0x148] sm:$0xff]  ;;  %v388_v35 = vld [vmem:[%s2178_s4 + $0x18] sm:$0xff] }
  0x30   : > { %318 = vmatpush.msra.mxu0 %v285_v14  ;;  %460 = vmatpush.msra.mxu3 %v1134_v37  ;;  %v1157_v14 = vld [vmem:[%s2178_s4 + $0x140] sm:$0xff]  ;;  %v386_v37 = vld [vmem:[%s2178_s4 + $0x8] sm:$0xff] }
  0x32   : > { %319 = vmatpush.msra.mxu0 %v284_v15  ;;  %461 = vmatpush.msra.mxu3 %v1133_v38  ;;  %v1156_v15 = vld [vmem:[%s2178_s4 + $0x138] sm:$0xff]  ;;  %v385_v38 = vld [vmem:[%s2178_s4] sm:$0xff] }
  0x33   : > { %320 = vmatmul.f32.vlgmr.msra.gmra.mxu0 %v276_v16  ;;  %v400_v16 = vld [vmem:[%s2178_s4 + $0x78] sm:$0xff] }
  0x34   : > { %462 = vmatpush.msra.mxu3 %v1132_v39  ;;  %v1184_v39 = vld [vmem:[%s2178_s4 + $0x1f8] sm:$0xff] }
  0x36   : > { %463 = vmatpush.msra.mxu3 %v1131_v40  ;;  %v1183_v40 = vld [vmem:[%s2178_s4 + $0x1f0] sm:$0xff] }
  0x38   : > { %464 = vmatpush.msra.mxu3 %v1130_v42  ;;  %v1181_v42 = vld [vmem:[%s2178_s4 + $0x1e0] sm:$0xff] }
  0x3a   : > { %465 = vmatpush.msra.mxu3 %v1129_v43  ;;  %v1180_v43 = vld [vmem:[%s2178_s4 + $0x1d8] sm:$0xff] }
  0x3b   : > { %323 = vmatmul.f32.gmra.mxu0 %v277_v17  ;;  %v399_v17 = vld [vmem:[%s2178_s4 + $0x70] sm:$0xff] }
  0x43   : > { %326 = vmatmul.f32.gmra.mxu0 %v278_v18  ;;  %v1155_v18 = vld [vmem:[%s2178_s4 + $0x130] sm:$0xff] }
  0x4b   : > { %329 = vmatmul.f32.gmra.mxu0 %v279_v19  ;;  %v398_v19 = vld [vmem:[%s2178_s4 + $0x68] sm:$0xff] }
  0x53   : > { %332 = vmatmul.f32.gmra.mxu0 %v280_v20  ;;  %v1154_v20 = vld [vmem:[%s2178_s4 + $0x128] sm:$0xff] }
  0x5b   : > { %335 = vmatmul.f32.gmra.mxu0 %v281_v21  ;;  %v397_v21 = vld [vmem:[%s2178_s4 + $0x60] sm:$0xff] }
  0x63   : > { %338 = vmatmul.f32.gmra.mxu0 %v282_v22  ;;  %v1153_v22 = vld [vmem:[%s2178_s4 + $0x120] sm:$0xff] }
  0x6b   : > { %341 = vmatmul.f32.gmra.mxu0 %v283_v23  ;;  %v396_v23 = vld [vmem:[%s2178_s4 + $0x58] sm:$0xff] }
  0xb0   : > { %v321_v26 = vpop.f32.mrf.mxu0 }
  0xb1   : > { %v322_v61 = vadd.f32 %v1328_v47, %v321_v26  ;;  %v1151_v26 = vld [vmem:[%s2178_s4 + $0x110] sm:$0xff] }
  0xb3   : > { %v1618_v0 = vmax.f32 %v322_v61, 0.0 }
  0xb8   : > { %v324_v31 = vpop.f32.mrf.mxu0 }
  0xb9   : > { %v325_v59 = vadd.f32 %v1328_v47, %v324_v31  ;;  %v392_v31 = vld [vmem:[%s2178_s4 + $0x38] sm:$0xff] }
  0xbb   : > { %v1613_v63 = vmax.f32 %v325_v59, 0.0 }
  0xc0   : > { %v327_v36 = vpop.f32.mrf.mxu0 }
  0xc1   : > { %v328_v57 = vadd.f32 %v1328_v47, %v327_v36  ;;  %v387_v36 = vld [vmem:[%s2178_s4 + $0x10] sm:$0xff] }
  0xc3   : > { %v1608_v62 = vmax.f32 %v328_v57, 0.0  ;;  %v1169_v57 = vld [vmem:[%s2178_s4 + $0x180] sm:$0xff] }
  0xc8   : > { %v330_v41 = vpop.f32.mrf.mxu0 }
  0xc9   : > { %v331_v55 = vadd.f32 %v1328_v47, %v330_v41  ;;  %v1182_v41 = vld [vmem:[%s2178_s4 + $0x1e8] sm:$0xff] }
  0xcb   : > { %v1603_v60 = vmax.f32 %v331_v55, 0.0  ;;  %v1170_v55 = vld [vmem:[%s2178_s4 + $0x188] sm:$0xff] }
  0xd0   : > { %v333_v44 = vpop.f32.mrf.mxu0 }
  0xd1   : > { %v334_v53 = vadd.f32 %v1328_v47, %v333_v44  ;;  %v1179_v44 = vld [vmem:[%s2178_s4 + $0x1d0] sm:$0xff] }
  0xd3   : > { %v1598_v58 = vmax.f32 %v334_v53, 0.0  ;;  %v1171_v53 = vld [vmem:[%s2178_s4 + $0x190] sm:$0xff] }
  0xd8   : > { %v336_v45 = vpop.f32.mrf.mxu0 }
  0xd9   : > { %v337_v51 = vadd.f32 %v1328_v47, %v336_v45  ;;  %v1178_v45 = vld [vmem:[%s2178_s4 + $0x1c8] sm:$0xff] }
  0xdb   : > { %v1593_v56 = vmax.f32 %v337_v51, 0.0  ;;  %v1172_v51 = vld [vmem:[%s2178_s4 + $0x198] sm:$0xff] }
  0xe0   : > { %v339_v46 = vpop.f32.mrf.mxu0 }
  0xe1   : > { %v340_v49 = vadd.f32 %v1328_v47, %v339_v46  ;;  %v1177_v46 = vld [vmem:[%s2178_s4 + $0x1c0] sm:$0xff] }
  0xe3   : > { %v1588_v54 = vmax.f32 %v340_v49, 0.0  ;;  %v1174_v49 = vld [vmem:[%s2178_s4 + $0x1a8] sm:$0xff] }
  0xe8   : > { %v342_v48 = vpop.f32.mrf.mxu0 }
  0xe9   : > { %v343_v50 = vadd.f32 %v1328_v47, %v342_v48  ;;  %v1176_v47 = vld [vmem:[%s2178_s4 + $0x1b8] sm:$0xff]  ;;  %v1175_v48 = vld [vmem:[%s2178_s4 + $0x1b0] sm:$0xff] }
  0xeb   : > { %v1586_v52 = vmax.f32 %v343_v50, 0.0  ;;  %v1173_v50 = vld [vmem:[%s2178_s4 + $0x1a0] sm:$0xff] }
  0xed   : > { %370 = vmatpush.msra.mxu1 %v1586_v52  ;;  %418 = vmatpush.msra.mxu2 %v1586_v52 }
  0xee   : > { %587 = vmatpush.msrb.mxu3 %v1586_v52 }
  0xef   : > { %371 = vmatpush.msra.mxu1 %v1588_v54  ;;  %419 = vmatpush.msra.mxu2 %v1588_v54 }
  0xf0   : > { %588 = vmatpush.msrb.mxu3 %v1588_v54 }
  0xf1   : > { %372 = vmatpush.msra.mxu1 %v1593_v56  ;;  %420 = vmatpush.msra.mxu2 %v1593_v56 }
  0xf2   : > { %589 = vmatpush.msrb.mxu3 %v1593_v56 }
  0xf3   : > { %373 = vmatpush.msra.mxu1 %v1598_v58  ;;  %421 = vmatpush.msra.mxu2 %v1598_v58 }
  0xf4   : > { %590 = vmatpush.msrb.mxu3 %v1598_v58 }
  0xf5   : > { %374 = vmatpush.msra.mxu1 %v1603_v60  ;;  %422 = vmatpush.msra.mxu2 %v1603_v60 }
  0xf6   : > { %591 = vmatpush.msrb.mxu3 %v1603_v60 }
  0xf7   : > { %375 = vmatpush.msra.mxu1 %v1608_v62  ;;  %423 = vmatpush.msra.mxu2 %v1608_v62 }
  0xf8   : > { %592 = vmatpush.msrb.mxu3 %v1608_v62 }
  0xf9   : > { %376 = vmatpush.msra.mxu1 %v1613_v63  ;;  %424 = vmatpush.msra.mxu2 %v1613_v63 }
  0xfa   : > { %593 = vmatpush.msrb.mxu3 %v1613_v63 }
  0xfb   : > { %377 = vmatpush.msra.mxu1 %v1618_v0  ;;  %425 = vmatpush.msra.mxu2 %v1618_v0 }
  0xfc   : > { %594 = vmatpush.msrb.mxu3 %v1618_v0  ;;  %1123 = vmatmul.msk.f32.vlgmr.msra.gmra.mxu1 %vm355_vm0, %v353_v1 }
  0xfd   : > { %1127 = vmatmul.msk.f32.vlgmr.msra.gmra.mxu2 %vm355_vm0, %v1125_v2  ;;  %473 = vmatpush.msrb.mxu1 %v400_v16  ;;  %v1205_v16 = vld [vmem:[%s2177_s3 + $0x50] sm:$0xff] }
  0xfe   : > { %513 = vmatpush.msrb.mxu2 %v1586_v52 }
  0xff   : > { %474 = vmatpush.msrb.mxu1 %v399_v17  ;;  %v1216_v17 = vld [vmem:[%s2178_s4 + $0x2b8] sm:$0xff] }
 0x100   : > { %514 = vmatpush.msrb.mxu2 %v1588_v54 }
 0x101   : > { %475 = vmatpush.msrb.mxu1 %v398_v19  ;;  %v1214_v19 = vld [vmem:[%s2178_s4 + $0x2a8] sm:$0xff] }
 0x102   : > { %515 = vmatpush.msrb.mxu2 %v1593_v56 }
 0x103   : > { %476 = vmatpush.msrb.mxu1 %v397_v21  ;;  %v1186_v21 = vld [vmem:[%s2177_s3 + $0x48] sm:$0xff] }
 0x104   : > { %516 = vmatpush.msrb.mxu2 %v1598_v58  ;;  %1124 = vmatmul.msk.f32.gmra.mxu1 %vm355_vm0, %v354_v3  ;;  %v1165_v3 = vld [vmem:[%s2177_s3 + $0x30] sm:$0xff] }
 0x105   : > { %1128 = vmatmul.msk.f32.gmra.mxu2 %vm355_vm0, %v1126_v4  ;;  %477 = vmatpush.msrb.mxu1 %v396_v23  ;;  %v1224_v4 = vld [vmem:[%s2178_s4 + $0x2f8] sm:$0xff] }
 0x106   : > { %517 = vmatpush.msrb.mxu2 %v1603_v60  ;;  %v1212_v23 = vld [vmem:[%s2178_s4 + $0x298] sm:$0xff] }
 0x107   : > { %478 = vmatpush.msrb.mxu1 %v395_v25  ;;  %v1210_v25 = vld [vmem:[%s2178_s4 + $0x288] sm:$0xff] }
 0x108   : > { %518 = vmatpush.msrb.mxu2 %v1608_v62 }
 0x109   : > { %479 = vmatpush.msrb.mxu1 %v394_v27  ;;  %v1204_v27 = vld [vmem:[%s2178_s4 + $0x278] sm:$0xff] }
 0x10a   : > { %519 = vmatpush.msrb.mxu2 %v1613_v63  ;;  %693 = vmatpush.msrb.mxu0 %v1204_v27  ;;  %v1255_v27 = vld [vmem:[%s2178_s4 + $0x3b0] sm:$0xff] }
 0x10b   : > { %480 = vmatpush.msrb.mxu1 %v393_v29  ;;  %v1202_v29 = vld [vmem:[%s2178_s4 + $0x268] sm:$0xff] }
 0x10c   : > { %520 = vmatpush.msrb.mxu2 %v1618_v0 }
 0x10d   : > { %1147 = vmatmul.msk.f32.vlgmr.msrb.gmra.mxu2 %vm355_vm0, %v1145_v6  ;;  %481 = vmatpush.msrb.mxu1 %v392_v31  ;;  %v1223_v6 = vld [vmem:[%s2178_s4 + $0x2f0] sm:$0xff]  ;;  %v1200_v31 = vld [vmem:[%s2178_s4 + $0x258] sm:$0xff] }
 0x10e   : > { %545 = vmatpush.msra.mxu2 %v1164_v5 }
 0x10f   : > { %482 = vmatpush.msrb.mxu1 %v391_v32  ;;  %v1199_v32 = vld [vmem:[%s2178_s4 + $0x250] sm:$0xff] }
 0x110   : > { %546 = vmatpush.msra.mxu2 %v1163_v7  ;;  %v1222_v7 = vld [vmem:[%s2178_s4 + $0x2e8] sm:$0xff] }
 0x111   : > { %483 = vmatpush.msrb.mxu1 %v390_v33  ;;  %v1198_v33 = vld [vmem:[%s2178_s4 + $0x248] sm:$0xff] }
 0x112   : > { %547 = vmatpush.msra.mxu2 %v1162_v8  ;;  %v1221_v8 = vld [vmem:[%s2178_s4 + $0x2e0] sm:$0xff] }
 0x113   : > { %484 = vmatpush.msrb.mxu1 %v389_v34  ;;  %v1197_v34 = vld [vmem:[%s2178_s4 + $0x240] sm:$0xff] }
 0x114   : > { %548 = vmatpush.msra.mxu2 %v1161_v9  ;;  %v1166_v9 = vld [vmem:[%s2177_s3 + $0x38] sm:$0xff] }
 0x115   : > { %1148 = vmatmul.msk.f32.gmra.mxu2 %vm355_vm0, %v1146_v11  ;;  %485 = vmatpush.msrb.mxu1 %v388_v35  ;;  %v1196_v35 = vld [vmem:[%s2178_s4 + $0x238] sm:$0xff] }
 0x116   : > { %549 = vmatpush.msra.mxu2 %v1160_v10  ;;  %v1220_v10 = vld [vmem:[%s2178_s4 + $0x2d8] sm:$0xff] }
 0x117   : > { %486 = vmatpush.msrb.mxu1 %v387_v36  ;;  %v1195_v36 = vld [vmem:[%s2178_s4 + $0x230] sm:$0xff] }
 0x118   : > { %550 = vmatpush.msra.mxu2 %v1159_v12  ;;  %v1219_v12 = vld [vmem:[%s2178_s4 + $0x2d0] sm:$0xff] }
 0x119   : > { %487 = vmatpush.msrb.mxu1 %v386_v37  ;;  %v1194_v37 = vld [vmem:[%s2178_s4 + $0x228] sm:$0xff] }
 0x11a   : > { %551 = vmatpush.msra.mxu2 %v1158_v13  ;;  %v1218_v13 = vld [vmem:[%s2178_s4 + $0x2c8] sm:$0xff] }
 0x11b   : > { %488 = vmatpush.msrb.mxu1 %v385_v38  ;;  %v1193_v38 = vld [vmem:[%s2178_s4 + $0x220] sm:$0xff] }
 0x11c   : > { %552 = vmatpush.msra.mxu2 %v1157_v14  ;;  %v1217_v14 = vld [vmem:[%s2178_s4 + $0x2c0] sm:$0xff] }
 0x11d   : > { %619 = vmatpush.msra.mxu1 %v1184_v39  ;;  %v1192_v39 = vld [vmem:[%s2178_s4 + $0x218] sm:$0xff] }
 0x11e   : > { %553 = vmatpush.msra.mxu2 %v1156_v15  ;;  %v1185_v15 = vld [vmem:[%s2177_s3 + $0x40] sm:$0xff] }
 0x11f   : > { %620 = vmatpush.msra.mxu1 %v1183_v40  ;;  %v1191_v40 = vld [vmem:[%s2178_s4 + $0x210] sm:$0xff] }
 0x120   : > { %554 = vmatpush.msra.mxu2 %v1155_v18  ;;  %v1215_v18 = vld [vmem:[%s2178_s4 + $0x2b0] sm:$0xff] }
 0x121   : > { %621 = vmatpush.msra.mxu1 %v1182_v41  ;;  %v1190_v41 = vld [vmem:[%s2178_s4 + $0x208] sm:$0xff] }
 0x122   : > { %555 = vmatpush.msra.mxu2 %v1154_v20  ;;  %v1213_v20 = vld [vmem:[%s2178_s4 + $0x2a0] sm:$0xff] }
 0x123   : > { %622 = vmatpush.msra.mxu1 %v1181_v42 }
 0x124   : > { %556 = vmatpush.msra.mxu2 %v1153_v22  ;;  %v1206_v22 = vld [vmem:[%s2177_s3 + $0x58] sm:$0xff] }
 0x125   : > { %623 = vmatpush.msra.mxu1 %v1180_v43 }
 0x126   : > { %557 = vmatpush.msra.mxu2 %v1152_v24  ;;  %v1211_v24 = vld [vmem:[%s2178_s4 + $0x290] sm:$0xff] }
 0x127   : > { %624 = vmatpush.msra.mxu1 %v1179_v44  ;;  %v1189_v44 = vld [vmem:[%s2178_s4 + $0x200] sm:$0xff] }
 0x128   : > { %558 = vmatpush.msra.mxu2 %v1151_v26  ;;  %v1209_v26 = vld [vmem:[%s2178_s4 + $0x280] sm:$0xff] }
 0x129   : > { %625 = vmatpush.msra.mxu1 %v1178_v45 }
 0x12a   : > { %559 = vmatpush.msra.mxu2 %v1150_v28  ;;  %v1203_v28 = vld [vmem:[%s2178_s4 + $0x270] sm:$0xff] }
 0x12b   : > { %626 = vmatpush.msra.mxu1 %v1177_v46  ;;  %694 = vmatpush.msrb.mxu0 %v1203_v28  ;;  %v1283_v28 = vld [vmem:[%s2178_s4 + $0x470] sm:$0xff] }
 0x12c   : > { %560 = vmatpush.msra.mxu2 %v1149_v30  ;;  %v1201_v30 = vld [vmem:[%s2178_s4 + $0x260] sm:$0xff] }
 0x12d   : > { %627 = vmatpush.msra.mxu1 %v1176_v47  ;;  %695 = vmatpush.msrb.mxu0 %v1202_v29  ;;  %v1254_v29 = vld [vmem:[%s2178_s4 + $0x3a8] sm:$0xff] }
 0x12e   : > { %735 = vmatpush.msrb.mxu2 %v1586_v52 }
 0x12f   : > { %628 = vmatpush.msra.mxu1 %v1175_v48  ;;  %696 = vmatpush.msrb.mxu0 %v1201_v30  ;;  %v1282_v30 = vld [vmem:[%s2178_s4 + $0x468] sm:$0xff] }
 0x130   : > { %736 = vmatpush.msrb.mxu2 %v1588_v54 }
 0x131   : > { %629 = vmatpush.msra.mxu1 %v1174_v49  ;;  %697 = vmatpush.msrb.mxu0 %v1200_v31  ;;  %v1253_v31 = vld [vmem:[%s2178_s4 + $0x3a0] sm:$0xff] }
 0x132   : > { %737 = vmatpush.msrb.mxu2 %v1593_v56 }
 0x133   : > { %630 = vmatpush.msra.mxu1 %v1173_v50  ;;  %698 = vmatpush.msrb.mxu0 %v1199_v32  ;;  %v1281_v32 = vld [vmem:[%s2178_s4 + $0x460] sm:$0xff] }
 0x134   : > { %738 = vmatpush.msrb.mxu2 %v1598_v58 }
 0x135   : > { %631 = vmatpush.msra.mxu1 %v1172_v51  ;;  %699 = vmatpush.msrb.mxu0 %v1198_v33 }
 0x136   : > { %739 = vmatpush.msrb.mxu2 %v1603_v60 }
 0x137   : > { %632 = vmatpush.msra.mxu1 %v1171_v53  ;;  %700 = vmatpush.msrb.mxu0 %v1197_v34  ;;  %v1252_v34 = vld [vmem:[%s2178_s4 + $0x398] sm:$0xff] }
 0x138   : > { %740 = vmatpush.msrb.mxu2 %v1608_v62 }
 0x139   : > { %633 = vmatpush.msra.mxu1 %v1170_v55  ;;  %701 = vmatpush.msrb.mxu0 %v1196_v35  ;;  %v1280_v35 = vld [vmem:[%s2178_s4 + $0x458] sm:$0xff] }
 0x13a   : > { %741 = vmatpush.msrb.mxu2 %v1613_v63 }
 0x13b   : > { %634 = vmatpush.msra.mxu1 %v1169_v57  ;;  %702 = vmatpush.msrb.mxu0 %v1195_v36 }
 0x13c   : > { %742 = vmatpush.msrb.mxu2 %v1618_v0 }
 0x13d   : > { %703 = vmatpush.msrb.mxu0 %v1194_v37  ;;  %v1251_v37 = vld [vmem:[%s2178_s4 + $0x390] sm:$0xff] }
 0x13f   : > { %704 = vmatpush.msrb.mxu0 %v1193_v38  ;;  %v1279_v38 = vld [vmem:[%s2178_s4 + $0x450] sm:$0xff] }
 0x141   : > { %705 = vmatpush.msrb.mxu0 %v1192_v39  ;;  %v1250_v39 = vld [vmem:[%s2178_s4 + $0x388] sm:$0xff] }
 0x143   : > { %706 = vmatpush.msrb.mxu0 %v1191_v40  ;;  %v1278_v40 = vld [vmem:[%s2178_s4 + $0x448] sm:$0xff] }
 0x145   : > { %707 = vmatpush.msrb.mxu0 %v1190_v41  ;;  %v1249_v41 = vld [vmem:[%s2178_s4 + $0x380] sm:$0xff] }
 0x147   : > { %708 = vmatpush.msrb.mxu0 %v1189_v44  ;;  %v1276_v44 = vld [vmem:[%s2178_s4 + $0x438] sm:$0xff] }
 0x179   : > { %v379_v59 = vpop.f32.mrf.mxu1 }
 0x17a   : > { %489 = vmatmul.f32.vlgmr.msrb.gmra.mxu1 %v379_v59  ;;  %v1225_v59 = vld [vmem:[%s2177_s3 + $0x60] sm:$0xff] }
 0x17b   : > { %809 = vmatpush.msrb.mxu1 %v1586_v52 }
 0x17d   : > { %810 = vmatpush.msrb.mxu1 %v1588_v54 }
 0x17f   : > { %811 = vmatpush.msrb.mxu1 %v1593_v56 }
 0x180   : > { %v427_v61 = vpop.f32.mrf.mxu2 }
 0x181   : > { %466 = vmatmul.f32.vlgmr.msra.gmra.mxu3 %v427_v61  ;;  %812 = vmatpush.msrb.mxu1 %v1598_v58  ;;  %v382_v1 = vpop.f32.mrf.mxu1 }
 0x182   : > { %661 = vmatpush.msra.mxu3 %v1586_v52  ;;  %492 = vmatmul.f32.gmra.mxu1 %v382_v1 }
 0x183   : > { %813 = vmatpush.msrb.mxu1 %v1603_v60 }
 0x184   : > { %662 = vmatpush.msra.mxu3 %v1588_v54 }
 0x185   : > { %814 = vmatpush.msrb.mxu1 %v1608_v62 }
 0x186   : > { %663 = vmatpush.msra.mxu3 %v1593_v56 }
 0x187   : > { %815 = vmatpush.msrb.mxu1 %v1613_v63 }
 0x188   : > { %664 = vmatpush.msra.mxu3 %v1598_v58  ;;  %v430_v2 = vpop.f32.mrf.mxu2 }
 0x189   : > { %469 = vmatmul.f32.gmra.mxu3 %v430_v2  ;;  %816 = vmatpush.msrb.mxu1 %v1618_v0  ;;  %v1226_v2 = vld [vmem:[%s2177_s3 + $0x68] sm:$0xff] }
 0x18a   : > { %665 = vmatpush.msra.mxu3 %v1603_v60 }
 0x18c   : > { %666 = vmatpush.msra.mxu3 %v1608_v62 }
 0x18e   : > { %667 = vmatpush.msra.mxu3 %v1613_v63 }
 0x190   : > { %668 = vmatpush.msra.mxu3 %v1618_v0  ;;  %v522_v5 = vpop.f32.mrf.mxu2 }
 0x191   : > { %1167 = vmatmul.msk.f32.vlgmr.msrb.gmra.mxu3 %vm355_vm0, %v1165_v3  ;;  %561 = vmatmul.f32.vlgmr.msra.gmra.mxu2 %v522_v5  ;;  %v1245_v5 = vld [vmem:[%s2177_s3 + $0x70] sm:$0xff] }
 0x192   : > { %767 = vmatpush.msrb.mxu3 %v1224_v4 }
 0x194   : > { %768 = vmatpush.msrb.mxu3 %v1223_v6  ;;  %v1246_v6 = vld [vmem:[%s2177_s3 + $0x78] sm:$0xff] }
 0x196   : > { %769 = vmatpush.msrb.mxu3 %v1222_v7  ;;  %v1266_v7 = vld [vmem:[%s2177_s3 + $0x88] sm:$0xff] }
 0x198   : > { %770 = vmatpush.msrb.mxu3 %v1221_v8  ;;  %v525_v11 = vpop.f32.mrf.mxu2  ;;  %v1237_v8 = vld [vmem:[%s2178_s4 + $0x340] sm:$0xff] }
 0x199   : > { %1168 = vmatmul.msk.f32.gmra.mxu3 %vm355_vm0, %v1166_v9  ;;  %564 = vmatmul.f32.gmra.mxu2 %v525_v11  ;;  %v1236_v9 = vld [vmem:[%s2178_s4 + $0x338] sm:$0xff]  ;;  %v1234_v11 = vld [vmem:[%s2178_s4 + $0x328] sm:$0xff] }
 0x19a   : > { %771 = vmatpush.msrb.mxu3 %v1220_v10  ;;  %v1235_v10 = vld [vmem:[%s2178_s4 + $0x330] sm:$0xff] }
 0x19c   : > { %772 = vmatpush.msrb.mxu3 %v1219_v12  ;;  %v1233_v12 = vld [vmem:[%s2178_s4 + $0x320] sm:$0xff] }
 0x19e   : > { %773 = vmatpush.msrb.mxu3 %v1218_v13  ;;  %v1264_v13 = vld [vmem:[%s2178_s4 + $0x3f8] sm:$0xff] }
 0x1a0   : > { %774 = vmatpush.msrb.mxu3 %v1217_v14  ;;  %v1232_v14 = vld [vmem:[%s2178_s4 + $0x318] sm:$0xff] }
 0x1a1   : > { %1187 = vmatmul.msk.f32.vlgmr.msra.gmra.mxu3 %vm355_vm0, %v1185_v15  ;;  %1207 = vmatmul.msk.f32.vlgmr.msrb.gmra.mxu2 %vm355_vm0, %v1205_v16  ;;  %v1263_v15 = vld [vmem:[%s2178_s4 + $0x3f0] sm:$0xff] }
 0x1a2   : > { %775 = vmatpush.msrb.mxu3 %v1216_v17  ;;  %v1231_v16 = vld [vmem:[%s2178_s4 + $0x310] sm:$0xff]  ;;  %v1262_v17 = vld [vmem:[%s2178_s4 + $0x3e8] sm:$0xff] }
 0x1a4   : > { %776 = vmatpush.msrb.mxu3 %v1215_v18  ;;  %v1230_v18 = vld [vmem:[%s2178_s4 + $0x308] sm:$0xff] }
 0x1a6   : > { %777 = vmatpush.msrb.mxu3 %v1214_v19  ;;  %v1261_v19 = vld [vmem:[%s2178_s4 + $0x3e0] sm:$0xff] }
 0x1a8   : > { %778 = vmatpush.msrb.mxu3 %v1213_v20  ;;  %v1229_v20 = vld [vmem:[%s2178_s4 + $0x300] sm:$0xff] }
 0x1a9   : > { %1188 = vmatmul.msk.f32.gmra.mxu3 %vm355_vm0, %v1186_v21  ;;  %1208 = vmatmul.msk.f32.gmra.mxu2 %vm355_vm0, %v1206_v22  ;;  %v1260_v21 = vld [vmem:[%s2178_s4 + $0x3d8] sm:$0xff]  ;;  %v1259_v22 = vld [vmem:[%s2178_s4 + $0x3d0] sm:$0xff] }
 0x1aa   : > { %779 = vmatpush.msrb.mxu3 %v1212_v23  ;;  %v1258_v23 = vld [vmem:[%s2178_s4 + $0x3c8] sm:$0xff] }
 0x1ac   : > { %780 = vmatpush.msrb.mxu3 %v1211_v24  ;;  %v1257_v24 = vld [vmem:[%s2178_s4 + $0x3c0] sm:$0xff] }
 0x1ae   : > { %781 = vmatpush.msrb.mxu3 %v1210_v25  ;;  %v1256_v25 = vld [vmem:[%s2178_s4 + $0x3b8] sm:$0xff] }
 0x1b0   : > { %782 = vmatpush.msrb.mxu3 %v1209_v26  ;;  %v1284_v26 = vld [vmem:[%s2178_s4 + $0x478] sm:$0xff] }
 0x1b1   : > { %989 = vmatpush.msra.mxu0 %v1284_v26 }
 0x1b2   : > { %883 = vmatpush.msra.mxu3 %v1586_v52 }
 0x1b3   : > { %990 = vmatpush.msra.mxu0 %v1283_v28 }
 0x1b4   : > { %884 = vmatpush.msra.mxu3 %v1588_v54 }
 0x1b5   : > { %991 = vmatpush.msra.mxu0 %v1282_v30 }
 0x1b6   : > { %885 = vmatpush.msra.mxu3 %v1593_v56 }
 0x1b7   : > { %992 = vmatpush.msra.mxu0 %v1281_v32 }
 0x1b8   : > { %886 = vmatpush.msra.mxu3 %v1598_v58 }
 0x1b9   : > { %993 = vmatpush.msra.mxu0 %v1280_v35 }
 0x1ba   : > { %887 = vmatpush.msra.mxu3 %v1603_v60 }
 0x1bb   : > { %994 = vmatpush.msra.mxu0 %v1279_v38 }
 0x1bc   : > { %888 = vmatpush.msra.mxu3 %v1608_v62 }
 0x1bd   : > { %995 = vmatpush.msra.mxu0 %v1278_v40 }
 0x1be   : > { %889 = vmatpush.msra.mxu3 %v1613_v63 }
 0x1c0   : > { %890 = vmatpush.msra.mxu3 %v1618_v0 }
 0x1f7   : > { %v490_v42 = vpop.f32.mrf.mxu1 }
 0x1ff   : > { %v493_v50 = vpop.f32.mrf.mxu1 }
 0x204   : > { %v467_v43 = vpop.f32.mrf.mxu3 }
 0x205   : > { %v491_v45 = vadd.f32 %v490_v42, %v467_v43  ;;  %v1277_v42 = vld [vmem:[%s2178_s4 + $0x440] sm:$0xff] }
 0x206   : > { %996 = vmatpush.msra.mxu0 %v1277_v42 }
 0x208   : > { %997 = vmatpush.msra.mxu0 %v1276_v44 }
 0x20c   : > { %v470_v46 = vpop.f32.mrf.mxu3 }
 0x20d   : > { %v494_v51 = vadd.f32 %v493_v50, %v470_v46  ;;  %v1275_v46 = vld [vmem:[%s2178_s4 + $0x430] sm:$0xff]  ;;  %v1272_v50 = vld [vmem:[%s2178_s4 + $0x418] sm:$0xff] }
 0x20e   : > { %998 = vmatpush.msra.mxu0 %v1275_v46 }
 0x214   : > { %v596_v47 = vpop.f32.mrf.mxu3  ;;  %v562_v48 = vpop.f32.mrf.mxu2 }
 0x215   : > { %635 = vmatmul.f32.vlgmr.msra.gmra.mxu1 %v596_v47  ;;  %v1954_v49 = vadd.f32 %v562_v48, %v491_v45  ;;  %v1274_v47 = vld [vmem:[%s2178_s4 + $0x428] sm:$0xff]  ;;  %v1273_v48 = vld [vmem:[%s2178_s4 + $0x420] sm:$0xff] }
 0x216   : > { %915 = vmatpush.msra.mxu1 %v1264_v13  ;;  %999 = vmatpush.msra.mxu0 %v1274_v47  ;;  %v1329_v13 = vld [vmem:[%s2179_s5] ss:$0 sm:$0xff] }
 0x218   : > { %916 = vmatpush.msra.mxu1 %v1263_v15  ;;  %1000 = vmatpush.msra.mxu0 %v1273_v48 }
 0x21a   : > { %917 = vmatpush.msra.mxu1 %v1262_v17  ;;  %1001 = vmatpush.msra.mxu0 %v1272_v50 }
 0x21c   : > { %v599_v53 = vpop.f32.mrf.mxu3  ;;  %v565_v55 = vpop.f32.mrf.mxu2  ;;  %918 = vmatpush.msra.mxu1 %v1261_v19 }
 0x21d   : > { %638 = vmatmul.f32.gmra.mxu1 %v599_v53  ;;  %v1956_v57 = vadd.f32 %v565_v55, %v494_v51  ;;  %v1271_v53 = vld [vmem:[%s2178_s4 + $0x410] sm:$0xff]  ;;  %v1270_v55 = vld [vmem:[%s2178_s4 + $0x408] sm:$0xff] }
 0x21e   : > { %919 = vmatpush.msra.mxu1 %v1260_v21  ;;  %1002 = vmatpush.msra.mxu0 %v1271_v53 }
 0x220   : > { %920 = vmatpush.msra.mxu1 %v1259_v22  ;;  %1003 = vmatpush.msra.mxu0 %v1270_v55 }
 0x222   : > { %921 = vmatpush.msra.mxu1 %v1258_v23 }
 0x224   : > { %v670_v61 = vpop.f32.mrf.mxu3  ;;  %v744_v1 = vpop.f32.mrf.mxu2  ;;  %922 = vmatpush.msra.mxu1 %v1257_v24 }
 0x225   : > { %709 = vmatmul.f32.vlgmr.msrb.gmra.mxu0 %v670_v61  ;;  %1227 = vmatmul.msk.f32.vlgmr.msrb.gmra.mxu1 %vm355_vm0, %v1225_v59  ;;  %v1269_v61 = vld [vmem:[%s2178_s4 + $0x400] sm:$0xff] }
 0x226   : > { %783 = vmatmul.f32.vlgmr.msrb.gmra.mxu3 %v744_v1  ;;  %923 = vmatpush.msra.mxu1 %v1256_v25 }
 0x227   : > { %957 = vmatpush.msrb.mxu3 %v1586_v52  ;;  %v1244_v52 = vld [vmem:[%s2178_s4 + $0x378] sm:$0xff]  ;;  %1004 = vmatpush.msra.mxu0 %v1269_v61 }
 0x228   : > { %841 = vmatpush.msra.mxu2 %v1244_v52  ;;  %924 = vmatpush.msra.mxu1 %v1255_v27 }
 0x229   : > { %958 = vmatpush.msrb.mxu3 %v1588_v54  ;;  %v1243_v54 = vld [vmem:[%s2178_s4 + $0x370] sm:$0xff] }
 0x22a   : > { %842 = vmatpush.msra.mxu2 %v1243_v54  ;;  %925 = vmatpush.msra.mxu1 %v1254_v29 }
 0x22b   : > { %959 = vmatpush.msrb.mxu3 %v1593_v56  ;;  %v1242_v56 = vld [vmem:[%s2178_s4 + $0x368] sm:$0xff] }
 0x22c   : > { %v673_v3 = vpop.f32.mrf.mxu3  ;;  %v747_v4 = vpop.f32.mrf.mxu2  ;;  %843 = vmatpush.msra.mxu2 %v1242_v56  ;;  %926 = vmatpush.msra.mxu1 %v1253_v31 }
 0x22d   : > { %960 = vmatpush.msrb.mxu3 %v1598_v58  ;;  %712 = vmatmul.f32.gmra.mxu0 %v673_v3  ;;  %v1241_v58 = vld [vmem:[%s2178_s4 + $0x360] sm:$0xff] }
 0x22e   : > { %786 = vmatmul.f32.gmra.mxu3 %v747_v4  ;;  %1228 = vmatmul.msk.f32.gmra.mxu1 %vm355_vm0, %v1226_v2 }
 0x22f   : > { %961 = vmatpush.msrb.mxu3 %v1603_v60  ;;  %v1240_v60 = vld [vmem:[%s2178_s4 + $0x358] sm:$0xff]  ;;  %844 = vmatpush.msra.mxu2 %v1241_v58 }
 0x230   : > { %927 = vmatpush.msra.mxu1 %v1252_v34 }
 0x231   : > { %962 = vmatpush.msrb.mxu3 %v1608_v62  ;;  %v1239_v62 = vld [vmem:[%s2178_s4 + $0x350] sm:$0xff]  ;;  %845 = vmatpush.msra.mxu2 %v1240_v60 }
 0x232   : > { %928 = vmatpush.msra.mxu1 %v1251_v37 }
 0x233   : > { %963 = vmatpush.msrb.mxu3 %v1613_v63  ;;  %v1238_v63 = vld [vmem:[%s2178_s4 + $0x348] sm:$0xff]  ;;  %846 = vmatpush.msra.mxu2 %v1239_v62 }
 0x234   : > { %929 = vmatpush.msra.mxu1 %v1250_v39 }
 0x235   : > { %964 = vmatpush.msrb.mxu3 %v1618_v0  ;;  %847 = vmatpush.msra.mxu2 %v1238_v63  ;;  %v1265_v0 = vld [vmem:[%s2177_s3 + $0x80] sm:$0xff] }
 0x236   : > { %1247 = vmatmul.msk.f32.vlgmr.msra.gmra.mxu3 %vm355_vm0, %v1245_v5  ;;  %930 = vmatpush.msra.mxu1 %v1249_v41 }
 0x237   : > { %848 = vmatpush.msra.mxu2 %v1237_v8 }
 0x239   : > { %849 = vmatpush.msra.mxu2 %v1236_v9 }
 0x23b   : > { %850 = vmatpush.msra.mxu2 %v1235_v10 }
 0x23d   : > { %851 = vmatpush.msra.mxu2 %v1234_v11 }
 0x23e   : > { %1248 = vmatmul.msk.f32.gmra.mxu3 %vm355_vm0, %v1246_v6 }
 0x23f   : > { %852 = vmatpush.msra.mxu2 %v1233_v12 }
 0x241   : > { %853 = vmatpush.msra.mxu2 %v1232_v14 }
 0x243   : > { %854 = vmatpush.msra.mxu2 %v1231_v16 }
 0x245   : > { %855 = vmatpush.msra.mxu2 %v1230_v18 }
 0x246   : > { %1267 = vmatmul.msk.f32.vlgmr.msrb.gmra.mxu3 %vm355_vm0, %v1265_v0 }
 0x247   : > { %856 = vmatpush.msra.mxu2 %v1229_v20  ;;  %v1022_v20 = vld [vmem:[%s2180_s6] sm:$0x1] }
 0x24e   : > { %1268 = vmatmul.msk.f32.gmra.mxu3 %vm355_vm0, %v1266_v7 }
 0x292   : > { %v636_v33 = vpop.f32.mrf.mxu1 }
 0x293   : > { %v642_v36 = vadd.f32 %v636_v33, %v1954_v49 }
 0x29a   : > { %v639_v43 = vpop.f32.mrf.mxu1 }
 0x29b   : > { %v643_v45 = vadd.f32 %v639_v43, %v1956_v57 }
 0x2a2   : > { %v818_v49 = vpop.f32.mrf.mxu1  ;;  %v710_v51 = vpop.f32.mrf.mxu0 }
 0x2a3   : > { %857 = vmatmul.f32.vlgmr.msra.gmra.mxu2 %v818_v49  ;;  %v716_v57 = vadd.f32 %v710_v51, %v642_v36 }
 0x2a9   : > { %v784_v59 = vpop.f32.mrf.mxu3 }
 0x2aa   : > { %v790_v1 = vadd.f32 %v784_v59, %v716_v57  ;;  %v713_v3 = vpop.f32.mrf.mxu0 }
 0x2ab   : > { %v821_v2 = vpop.f32.mrf.mxu1  ;;  %v717_v4 = vadd.f32 %v713_v3, %v643_v45 }
 0x2ac   : > { %860 = vmatmul.f32.gmra.mxu2 %v821_v2 }
 0x2b1   : > { %v787_v52 = vpop.f32.mrf.mxu3 }
 0x2b2   : > { %v791_v54 = vadd.f32 %v787_v52, %v717_v4 }
 0x2b9   : > { %v892_v56 = vpop.f32.mrf.mxu3 }
 0x2ba   : > { %931 = vmatmul.f32.vlgmr.msra.gmra.mxu1 %v892_v56 }
 0x2c1   : > { %v895_v58 = vpop.f32.mrf.mxu3 }
 0x2c2   : > { %934 = vmatmul.f32.gmra.mxu1 %v895_v58 }
 0x2c9   : > { %v966_v5 = vpop.f32.mrf.mxu3 }
 0x2ca   : > { %1005 = vmatmul.f32.vlgmr.msra.gmra.mxu0 %v966_v5 }
 0x2d1   : > { %v969_v60 = vpop.f32.mrf.mxu3 }
 0x2d2   : > { %1008 = vmatmul.f32.gmra.mxu0 %v969_v60 }
 0x326   : > { %v858_v62 = vpop.f32.mrf.mxu2 }
 0x327   : > { %v864_v7 = vadd.f32 %v858_v62, %v790_v1 }
 0x32f   : > { %v861_v0 = vpop.f32.mrf.mxu2 }
 0x330   : > { %v865_v9 = vadd.f32 %v861_v0, %v791_v54 }
 0x337   : > { %v932_v63 = vpop.f32.mrf.mxu1 }
 0x338   : > { %v938_v10 = vadd.f32 %v932_v63, %v864_v7 }
 0x33f   : > { %v935_v8 = vpop.f32.mrf.mxu1 }
 0x340   : > { %v939_v11 = vadd.f32 %v935_v8, %v865_v9 }
 0x347   : > { %v1006_v6 = vpop.f32.mrf.mxu0 }
 0x348   : > { %v1012_v12 = vadd.f32 %v1006_v6, %v938_v10 }
 0x34a   : > { %v1018_v16 = vadd.f32 %v1329_v13, %v1012_v12 }
 0x34c   : > { %v1020_v19 = vmax.f32 %v1018_v16, 0.0 }
 0x34f   : > { %v1009_v14 = vpop.f32.mrf.mxu0 }
 0x350   : > { %v1013_v15 = vadd.f32 %v1009_v14, %v939_v11 }
 0x352   : > { %v1019_v17 = vadd.f32 %v1329_v13, %v1013_v15 }
 0x354   : > { %v1021_v18 = vmax.f32 %v1019_v17, 0.0 }
 0x356   : > { %1041 = vmatpush.msrb.mxu2 %v1021_v18 }
 0x358   : > { %1042 = vmatpush.msrb.mxu2 %v1020_v19 }
 0x359   : > { %1285 = vmatmul.msk.f32.vlgmr.msrb.gmra.mxu2 %vm1023_vm1, %v1022_v20 }
 0x3dc   : > { %v1044_v21 = vpop.f32.mrf.mxu2 }
 0x3dd   : > { %1048 = vst.msk [vmem:[%s270_s20] sm:$0x1] %vm1047_vm2, %v1044_v21 }
 0x3de   : > { %1357 = shalt.err (!%p1354_p3)
}
 0x3df   : > { %1289 = dma.vmem_to_hbm [thread:$0]  (%p1472_p5), %s1061_s22, 16, %s1063_s21, %s1050_s23  }
 0x3e0 PF: > { %p1295_p4 = scmp.ge.s32.totalorder %s1392_s27, 2  ;;  %s1074_s16 = sand.u32 1, %s1380_s24  }
 0x3e1   : > { %s1075_s17 = scalar_lea.sflag [#allocation3], %s1074_s16 }
 0x3e2   : > { %p1292_p7 = pnand %p1295_p4, %p1476_p6 }
 0x3e4   : > { %p1293_p8 = pneg %p1292_p7 }
 0x3e6   : > { %1375 = dma.done.wait (%p1293_p8), %s1075_s17, 16  }
 0x3e7   : > { %1377 = vsyncadd (%p1293_p8), %s1075_s17, 4294967280  ;;  %p17_p9 = scmp.ge.s32.totalorder %s1459_s30, 4   ;;  %s2184_s24 = smov %s1384_s25 }
 0x3e8   : > { %s2185_s25 = smov %s1388_s26  ;;  %s2186_s26 = smov %s1470_s10 }
 0x3e9   : > { %s2187_s27 = smov %s1459_s30  ;;  %19 = sbr.rel (!%p17_p9) target bundleno = 3 (0x3), region = 99 }
 0x3ee   :  { %1080 = vsyncpa [#allocation3], 1 }
 0x3ef   :  { %1082 = vsyncpa [#allocation3 + $0x1], 1 }

</bundles_post_ra>
